<compile_context>
chip_gen: v7x
topology: tpu7x:2x2x1
jax: 0.10.0
libtpu: 0.0.40
codegen_flags: <defaults>
</compile_context>

<pallas_src>
import functools

import jax
import jax.numpy as jnp
from jax.experimental import pallas as pl
from jax.experimental.pallas import tpu as pltpu


VMEM_LIMIT = 32 * 1024 * 1024   # conservative budget, fits v5e/v6e/v7x scoped VMEM
DEFAULT_TM = 256                # row tile for linear / FFN / LN kernels


def _row_tile(m, tm=DEFAULT_TM):
    return min(tm, m)


# ----------------------------- Pallas kernels ------------------------------ #

def _linear_kernel(x_ref, w_ref, b_ref, o_ref):
    # o = x @ w + b   (bias broadcast over rows), f32 accumulation on the MXU.
    acc = jnp.dot(x_ref[...], w_ref[...], preferred_element_type=jnp.float32)
    o_ref[...] = (acc + b_ref[...]).astype(o_ref.dtype)


def linear(x, w, b, *, tm=DEFAULT_TM):
    """x: [M, K], w: [K, N], b: [N] -> [M, N], row-tiled, weights resident."""
    M, K = x.shape
    N = w.shape[1]
    TM = _row_tile(M, tm)
    return pl.pallas_call(
        _linear_kernel,
        out_shape=jax.ShapeDtypeStruct((M, N), x.dtype),
        grid=(pl.cdiv(M, TM),),
        in_specs=[
            pl.BlockSpec((TM, K), lambda i: (i, 0)),
            pl.BlockSpec((K, N), lambda i: (0, 0)),
            pl.BlockSpec((1, N), lambda i: (0, 0)),
        ],
        out_specs=pl.BlockSpec((TM, N), lambda i: (i, 0)),
        compiler_params=pltpu.CompilerParams(
            dimension_semantics=("parallel",),
            vmem_limit_bytes=VMEM_LIMIT),
    )(x, w, b.reshape(1, N))


def _layernorm_f32(y, g, b, out_dtype):
    mu = jnp.mean(y, axis=-1, keepdims=True)
    var = jnp.mean((y - mu) ** 2, axis=-1, keepdims=True)
    yn = (y - mu) * jax.lax.rsqrt(var + 1e-5)
    return (yn * g + b).astype(out_dtype)


def _linear_res_ln_kernel(x_ref, w_ref, b_ref, r_ref, g_ref, bt_ref, o_ref):
    # o = LayerNorm(res + (x @ w + b))  -- output projection + residual + post-norm
    y = jnp.dot(x_ref[...], w_ref[...], preferred_element_type=jnp.float32) + b_ref[...]
    y = y + r_ref[...].astype(jnp.float32)
    o_ref[...] = _layernorm_f32(y, g_ref[...], bt_ref[...], o_ref.dtype)


def linear_residual_ln(x, w, b, res, gamma, beta, *, tm=DEFAULT_TM):
    """LN(res + (x @ w + b)).  x: [M, K], w: [K, N], res: [M, N] -> [M, N]."""
    M, K = x.shape
    N = w.shape[1]
    TM = _row_tile(M, tm)
    return pl.pallas_call(
        _linear_res_ln_kernel,
        out_shape=jax.ShapeDtypeStruct((M, N), res.dtype),
        grid=(pl.cdiv(M, TM),),
        in_specs=[
            pl.BlockSpec((TM, K), lambda i: (i, 0)),
            pl.BlockSpec((K, N), lambda i: (0, 0)),
            pl.BlockSpec((1, N), lambda i: (0, 0)),
            pl.BlockSpec((TM, N), lambda i: (i, 0)),
            pl.BlockSpec((1, N), lambda i: (0, 0)),
            pl.BlockSpec((1, N), lambda i: (0, 0)),
        ],
        out_specs=pl.BlockSpec((TM, N), lambda i: (i, 0)),
        compiler_params=pltpu.CompilerParams(
            dimension_semantics=("parallel",),
            vmem_limit_bytes=VMEM_LIMIT),
    )(x, w, b.reshape(1, N), res, gamma.reshape(1, N), beta.reshape(1, N))


def _ffn_res_ln_kernel(x_ref, w1_ref, b1_ref, w2_ref, b2_ref, g_ref, bt_ref, o_ref):
    # o = LayerNorm(x + relu(x @ w1 + b1) @ w2 + b2)
    x = x_ref[...]
    h = jnp.dot(x, w1_ref[...], preferred_element_type=jnp.float32) + b1_ref[...]
    h = jnp.maximum(h, 0.0)                              # relu
    y = jnp.dot(h.astype(x.dtype), w2_ref[...],
                preferred_element_type=jnp.float32) + b2_ref[...]
    y = y + x.astype(jnp.float32)
    o_ref[...] = _layernorm_f32(y, g_ref[...], bt_ref[...], o_ref.dtype)


def ffn_residual_ln(x, w1, b1, w2, b2, gamma, beta, *, tm=DEFAULT_TM):
    """LN(x + FFN(x)).  x: [M, D], w1: [D, F], w2: [F, D] -> [M, D]."""
    # TODO(synk): for very large d_ff add a K-tile over F with a VMEM f32 accumulator.
    M, D = x.shape
    F = w1.shape[1]
    TM = _row_tile(M, tm)
    return pl.pallas_call(
        _ffn_res_ln_kernel,
        out_shape=jax.ShapeDtypeStruct((M, D), x.dtype),
        grid=(pl.cdiv(M, TM),),
        in_specs=[
            pl.BlockSpec((TM, D), lambda i: (i, 0)),
            pl.BlockSpec((D, F), lambda i: (0, 0)),
            pl.BlockSpec((1, F), lambda i: (0, 0)),
            pl.BlockSpec((F, D), lambda i: (0, 0)),
            pl.BlockSpec((1, D), lambda i: (0, 0)),
            pl.BlockSpec((1, D), lambda i: (0, 0)),
            pl.BlockSpec((1, D), lambda i: (0, 0)),
        ],
        out_specs=pl.BlockSpec((TM, D), lambda i: (i, 0)),
        compiler_params=pltpu.CompilerParams(
            dimension_semantics=("parallel",),
            vmem_limit_bytes=VMEM_LIMIT),
    )(x, w1, b1.reshape(1, F), w2, b2.reshape(1, D),
      gamma.reshape(1, D), beta.reshape(1, D))


def _attn_core(q, k, v, *, H, dk, dv, causal):
    """q: [Sq, H*dk], k: [Sk, H*dk], v: [Sk, H*dv] -> [Sq, H*dv] (f32)."""
    Sq, Sk = q.shape[0], k.shape[0]
    scale = 1.0 / (dk ** 0.5)
    if causal:
        qi = jax.lax.broadcasted_iota(jnp.int32, (Sq, Sk), 0)
        ki = jax.lax.broadcasted_iota(jnp.int32, (Sq, Sk), 1)
        mask = qi >= ki
    outs = []
    for h in range(H):                                   # static unroll over heads
        qh = q[:, h * dk:(h + 1) * dk]
        kh = k[:, h * dk:(h + 1) * dk]
        vh = v[:, h * dv:(h + 1) * dv]
        # contract the last dims directly (no materialized k.T)
        s = jax.lax.dot_general(qh, kh, (((1,), (1,)), ((), ())),
                                preferred_element_type=jnp.float32) * scale
        if causal:
            s = jnp.where(mask, s, -jnp.inf)
        m = jnp.max(s, axis=-1, keepdims=True)
        p = jnp.exp(s - m)
        l = jnp.sum(p, axis=-1, keepdims=True)
        o = jnp.dot(p.astype(vh.dtype), vh, preferred_element_type=jnp.float32)
        # defer normalization to the (narrower) output; EUP approx reciprocal
        outs.append(o * pl.reciprocal(l, approx=True))
    return jnp.concatenate(outs, axis=-1)                # single lane-dense store


def _self_attn_kernel(qkv_ref, o_ref, *, H, dk, dv, causal):
    qkv = qkv_ref[0]                                     # [S, H*(2*dk+dv)]
    Hdk = H * dk
    q = qkv[:, :Hdk]
    k = qkv[:, Hdk:2 * Hdk]
    v = qkv[:, 2 * Hdk:]
    o_ref[0] = _attn_core(q, k, v, H=H, dk=dk, dv=dv, causal=causal).astype(o_ref.dtype)


def _cross_attn_kernel(q_ref, kv_ref, o_ref, *, H, dk, dv):
    q = q_ref[0]                                         # [Sq, H*dk]
    kv = kv_ref[0]                                       # [Sk, H*(dk+dv)]
    Hdk = H * dk
    k = kv[:, :Hdk]
    v = kv[:, Hdk:]
    o_ref[0] = _attn_core(q, k, v, H=H, dk=dk, dv=dv, causal=False).astype(o_ref.dtype)


def self_attention(qkv, *, num_heads, d_k, d_v, causal):
    """qkv: [B, S, H*(2*dk+dv)] packed Q|K|V -> [B, S, H*dv]."""
    # TODO(synk): for long sequences convert to flash-style online softmax with a
    #             KV-tile grid axis instead of materializing the [Sq, Sk] scores.
    B, S, C = qkv.shape
    Hdv = num_heads * d_v
    kernel = functools.partial(_self_attn_kernel, H=num_heads, dk=d_k, dv=d_v,
                               causal=causal)
    return pl.pallas_call(
        kernel,
        out_shape=jax.ShapeDtypeStruct((B, S, Hdv), qkv.dtype),
        grid=(B,),
        in_specs=[pl.BlockSpec((1, S, C), lambda b: (b, 0, 0))],
        out_specs=pl.BlockSpec((1, S, Hdv), lambda b: (b, 0, 0)),
        compiler_params=pltpu.CompilerParams(
            dimension_semantics=("parallel",),
            vmem_limit_bytes=VMEM_LIMIT),
    )(qkv)


def cross_attention(q, kv, *, num_heads, d_k, d_v):
    """q: [B, Sq, H*dk], kv: [B, Sk, H*(dk+dv)] packed K|V -> [B, Sq, H*dv]."""
    B, Sq, Hdk = q.shape
    Sk, Ckv = kv.shape[1], kv.shape[2]
    Hdv = num_heads * d_v
    kernel = functools.partial(_cross_attn_kernel, H=num_heads, dk=d_k, dv=d_v)
    return pl.pallas_call(
        kernel,
        out_shape=jax.ShapeDtypeStruct((B, Sq, Hdv), q.dtype),
        grid=(B,),
        in_specs=[pl.BlockSpec((1, Sq, Hdk), lambda b: (b, 0, 0)),
                  pl.BlockSpec((1, Sk, Ckv), lambda b: (b, 0, 0))],
        out_specs=pl.BlockSpec((1, Sq, Hdv), lambda b: (b, 0, 0)),
        compiler_params=pltpu.CompilerParams(
            dimension_semantics=("parallel",),
            vmem_limit_bytes=VMEM_LIMIT),
    )(q, kv)


# --------------------------- Transformer assembly -------------------------- #

def self_mha(x, p, *, causal):
    """Self multi-head attention (pre output-projection). x: [B,S,D] -> [B,S,H*dv]."""
    B, S, D = x.shape
    qkv = linear(x.reshape(B * S, D), p["w_qkv"], p["b_qkv"]).reshape(B, S, -1)
    return self_attention(qkv, num_heads=p["num_heads"], d_k=p["d_k"],
                          d_v=p["d_v"], causal=causal)


def cross_mha(x_q, x_kv, p):
    """Cross attention (pre output-projection). x_q: [B,Sq,D], x_kv: [B,Sk,D]."""
    B, Sq, D = x_q.shape
    Sk = x_kv.shape[1]
    q = linear(x_q.reshape(B * Sq, D), p["wq"], p["bq"]).reshape(B, Sq, -1)
    kv = linear(x_kv.reshape(B * Sk, D), p["w_kv"], p["b_kv"]).reshape(B, Sk, -1)
    return cross_attention(q, kv, num_heads=p["num_heads"], d_k=p["d_k"], d_v=p["d_v"])


def encoder_layer(x, p):
    B, S, D = x.shape
    M = B * S
    a = self_mha(x, p["attn"], causal=False)                       # [B,S,H*dv]
    x = linear_residual_ln(a.reshape(M, -1), p["attn"]["wo"], p["attn"]["bo"],
                           x.reshape(M, D), p["ln1_g"], p["ln1_b"]).reshape(B, S, D)
    x = ffn_residual_ln(x.reshape(M, D), p["w1"], p["b1"], p["w2"], p["b2"],
                        p["ln2_g"], p["ln2_b"]).reshape(B, S, D)
    return x


def decoder_layer(x, enc, p):
    B, S, D = x.shape
    M = B * S
    a = self_mha(x, p["self_attn"], causal=True)
    x = linear_residual_ln(a.reshape(M, -1), p["self_attn"]["wo"], p["self_attn"]["bo"],
                           x.reshape(M, D), p["ln1_g"], p["ln1_b"]).reshape(B, S, D)
    c = cross_mha(x, enc, p["cross_attn"])
    x = linear_residual_ln(c.reshape(M, -1), p["cross_attn"]["wo"], p["cross_attn"]["bo"],
                           x.reshape(M, D), p["ln2_g"], p["ln2_b"]).reshape(B, S, D)
    x = ffn_residual_ln(x.reshape(M, D), p["w1"], p["b1"], p["w2"], p["b2"],
                        p["ln3_g"], p["ln3_b"]).reshape(B, S, D)
    return x


def transformer_forward(src, tgt, params):
    """Encoder-decoder transformer forward. src/tgt: [B, S, d_model]."""
    x = src
    for lp in params["encoder"]:
        x = encoder_layer(x, lp)
    enc_out = x
    y = tgt
    for lp in params["decoder"]:
        y = decoder_layer(y, enc_out, lp)
    return y


# ----------------------------- parameter init ------------------------------ #

def init_params(key, *, d_model, d_k, d_v, num_heads, d_ff,
                num_encoder_layers, num_decoder_layers):
    keys = iter(jax.random.split(key, 4096))

    def w(din, dout):
        return jax.random.normal(next(keys), (din, dout), jnp.float32) * 0.02

    Hdk, Hdv = num_heads * d_k, num_heads * d_v

    def self_attn_params():
        return {
            "num_heads": num_heads, "d_k": d_k, "d_v": d_v,
            "w_qkv": w(d_model, 2 * Hdk + Hdv),
            "b_qkv": jnp.zeros((2 * Hdk + Hdv,), jnp.float32),
            "wo": w(Hdv, d_model), "bo": jnp.zeros((d_model,), jnp.float32),
        }

    def cross_attn_params():
        return {
            "num_heads": num_heads, "d_k": d_k, "d_v": d_v,
            "wq": w(d_model, Hdk), "bq": jnp.zeros((Hdk,), jnp.float32),
            "w_kv": w(d_model, Hdk + Hdv),
            "b_kv": jnp.zeros((Hdk + Hdv,), jnp.float32),
            "wo": w(Hdv, d_model), "bo": jnp.zeros((d_model,), jnp.float32),
        }

    def ffn_ln(num_ln):
        d = {
            "w1": w(d_model, d_ff), "b1": jnp.zeros((d_ff,), jnp.float32),
            "w2": w(d_ff, d_model), "b2": jnp.zeros((d_model,), jnp.float32),
        }
        for i in range(1, num_ln + 1):
            d[f"ln{i}_g"] = jnp.ones((d_model,), jnp.float32)
            d[f"ln{i}_b"] = jnp.zeros((d_model,), jnp.float32)
        return d

    enc_layers = []
    for _ in range(num_encoder_layers):
        lp = {"attn": self_attn_params()}
        lp.update(ffn_ln(2))
        enc_layers.append(lp)

    dec_layers = []
    for _ in range(num_decoder_layers):
        lp = {"self_attn": self_attn_params(), "cross_attn": cross_attn_params()}
        lp.update(ffn_ln(3))
        dec_layers.append(lp)

    return {"encoder": enc_layers, "decoder": dec_layers}


# ----------------------------------- main ----------------------------------- #

if __name__ == "__main__":
    # Small config consistent with TransformerCfg
    d_model, d_k, d_v, num_heads, d_ff = 32, 8, 8, 4, 64
    num_encoder_layers, num_decoder_layers = 1, 1
    B, S_src, S_tgt = 2, 8, 8

    key = jax.random.PRNGKey(0)
    k_p, k_src, k_tgt = jax.random.split(key, 3)

    params = init_params(
        k_p, d_model=d_model, d_k=d_k, d_v=d_v, num_heads=num_heads, d_ff=d_ff,
        num_encoder_layers=num_encoder_layers, num_decoder_layers=num_decoder_layers)

    src = jax.random.normal(k_src, (B, S_src, d_model), jnp.float32)
    tgt = jax.random.normal(k_tgt, (B, S_tgt, d_model), jnp.float32)

    out = transformer_forward(src, tgt, params)
    out = jax.block_until_ready(out)
    assert out.shape == (B, S_tgt, d_model), out.shape
    assert jnp.all(jnp.isfinite(out))
    print("KERNEL_OK")
</pallas_src>

<mosaic_0001>
module attributes {stable_mosaic.version = 11 : i64} {
  func.func @_linear_kernel(%arg0: i32, %arg1: memref<16x32xf32, #tpu.memory_space<vmem>>, %arg2: memref<32x96xf32, #tpu.memory_space<vmem>>, %arg3: memref<1x96xf32, #tpu.memory_space<vmem>>, %arg4: memref<16x96xf32, #tpu.memory_space<vmem>>) attributes {dimension_semantics = [#tpu.dimension_semantics<parallel>], iteration_bounds = array<i64: 1>, scalar_prefetch = 0 : i64, scratch_operands = 0 : i64, tpu.core_type = #tpu.core_type<tc>, window_params = [{transform_indices = @transform_0, window_bounds = array<i64: 16, 32>}, {pipeline_mode = #tpu.pipeline_mode<synchronous>, transform_indices = @transform_1, window_bounds = array<i64: 32, 96>}, {pipeline_mode = #tpu.pipeline_mode<synchronous>, transform_indices = @transform_2, window_bounds = array<i64: 1, 96>}, {transform_indices = @transform_3, window_bounds = array<i64: 16, 96>}]} {
    %c0 = arith.constant 0 : index
    %c0_0 = arith.constant 0 : index
    %0 = vector.load %arg1[%c0, %c0_0] : memref<16x32xf32, #tpu.memory_space<vmem>>, vector<16x32xf32>
    %c0_1 = arith.constant 0 : index
    %c0_2 = arith.constant 0 : index
    %1 = vector.load %arg2[%c0_1, %c0_2] : memref<32x96xf32, #tpu.memory_space<vmem>>, vector<32x96xf32>
    %cst = arith.constant dense<0.000000e+00> : vector<16x96xf32>
    %2 = tpu.matmul %0, %1, %cst {dimension_numbers = #tpu.dot_dimension_numbers<[1], [0], [0], [1], [0, 0, 1, 1], [], []>} : vector<16x32xf32>, vector<32x96xf32>, vector<16x96xf32> -> vector<16x96xf32>
    %c0_3 = arith.constant 0 : index
    %c0_4 = arith.constant 0 : index
    %3 = vector.load %arg3[%c0_3, %c0_4] : memref<1x96xf32, #tpu.memory_space<vmem>>, vector<1x96xf32>
    %4 = vector.broadcast %3 : vector<1x96xf32> to vector<16x96xf32>
    %5 = arith.addf %2, %4 : vector<16x96xf32>
    %c0_5 = arith.constant 0 : index
    %c0_6 = arith.constant 0 : index
    %6 = vector.load %arg4[%c0_5, %c0_6] : memref<16x96xf32, #tpu.memory_space<vmem>>, vector<16x96xf32>
    tpu.vector_store %arg4[%c0_5, %c0_6], %5 {strides = array<i32>} : memref<16x96xf32, #tpu.memory_space<vmem>>, vector<16x96xf32>,
    return
  }
  func.func @transform_0(%arg0: i32) -> (i32, i32) {
    %c0_i32 = arith.constant 0 : i32
    %c0_i32_0 = arith.constant 0 : i32
    return %arg0, %c0_i32 : i32, i32
  }
  func.func @transform_1(%arg0: i32) -> (i32, i32) {
    %c0_i32 = arith.constant 0 : i32
    %c0_i32_0 = arith.constant 0 : i32
    %c0_i32_1 = arith.constant 0 : i32
    return %c0_i32, %c0_i32_0 : i32, i32
  }
  func.func @transform_2(%arg0: i32) -> (i32, i32) {
    %c0_i32 = arith.constant 0 : i32
    %c0_i32_0 = arith.constant 0 : i32
    %c0_i32_1 = arith.constant 0 : i32
    return %c0_i32, %c0_i32_0 : i32, i32
  }
  func.func @transform_3(%arg0: i32) -> (i32, i32) {
    %c0_i32 = arith.constant 0 : i32
    %c0_i32_0 = arith.constant 0 : i32
    return %arg0, %c0_i32 : i32, i32
  }
}

</mosaic_0001>

<bundles_post_ra>
// kernel: tpu_custom_call.1
= control target key start
LH: loop header
LB: loop body
LE: loop exit
PB: predicated region body
PF: predicated region fallthrough
CT: control target
= control target key end

     0   :  { %8 = vsyncpa [#allocation3], 0  ;;  %s337_s0 = inlined_call_operand.hbm [shape: f32[16,32], index: 0, kind: input, shape index: {}]   ;;  %s338_s1 = inlined_call_operand.hbm [shape: f32[32,96], index: 1, kind: input, shape index: {}]   ;;  %s339_s2 = inlined_call_operand.vmem [shape: f32[1,96], index: 2, kind: input, shape index: {}]   ;;  %s340_s3 = inlined_call_operand.hbm [shape: f32[16,96], index: 3, kind: output, shape index: {}]  }
   0x1   :  { %9 = vsyncpa [#allocation6], 0 }
   0x2   :  { %10 = vsyncpa [#allocation4], 0  ;;  %s264_s12 = smov [#allocation2]   ;;  %s192_s16 = scalar_lea.hbm %s337_s0, 256 }
   0x3   :  { %s16_s13 = sshll.u32 %s264_s12, 4  ;;  %p193_p0 = scmp.ne.s32.totalorder %s337_s0, %s192_s16  ;;  %s17_s13 = int_to_ptr.vmem [resolvable:$true] %s16_s13 }
   0x4   :  { %p196_p1 = scmp.lt.u32.totalorder %s192_s16, %s337_s0 }
   0x6   :  { %p198_p2 = pnand %p196_p1, %p193_p0 }
   0x8   :  { %201 = shalt.err (!%p198_p2)
}
   0x9   :  { %s202_s21 = scalar_lea.vmem %s17_s13, 256  ;;  %p207_p4 = scmp.lt.s32.totalorder %s17_s13, %s17_s13 }
   0xa   :  { %p203_p3 = scmp.ne.s32.totalorder %s17_s13, %s202_s21  ;;  %p208_p5 = scmp.lt.s32.totalorder %s202_s21, %s202_s21 }
   0xc   :  { %p209_p6 = por %p208_p5, %p207_p4 }
   0xe   :  { %p210_p7 = pnand %p209_p6, %p203_p3 }
  0x10   :  { %213 = shalt.err (!%p210_p7)
}
  0x11   :  { %s265_s22 = smov 128   ;;  %s266_s23 = smov 8  }
  0x12   :  { %22 = dma.hbm_to_vmem [thread:$0]  %s337_s0, 256, %s17_s13, [#allocation3], %s265_s22, %s265_s22, %s266_s23  }
  0x13   :  { %s267_s26 = smov [#allocation5]   ;;  %s214_s30 = scalar_lea.hbm %s338_s1, 512 }
  0x14   :  { %s28_s27 = sshll.u32 %s267_s26, 4  ;;  %p215_p8 = scmp.ne.s32.totalorder %s338_s1, %s214_s30  ;;  %s29_s27 = int_to_ptr.vmem [resolvable:$true] %s28_s27 }
  0x15   :  { %p218_p9 = scmp.lt.u32.totalorder %s214_s30, %s338_s1 }
  0x17   :  { %p220_p10 = pnand %p218_p9, %p215_p8 }
  0x19   :  { %223 = shalt.err (!%p220_p10)
}
  0x1a   :  { %s224_s8 = scalar_lea.vmem %s29_s27, 512  ;;  %p229_p12 = scmp.lt.s32.totalorder %s29_s27, %s29_s27 }
  0x1b   :  { %p225_p11 = scmp.ne.s32.totalorder %s29_s27, %s224_s8  ;;  %p230_p13 = scmp.lt.s32.totalorder %s224_s8, %s224_s8 }
  0x1d   :  { %p231_p0 = por %p230_p13, %p229_p12 }
  0x1f   :  { %p232_p1 = pnand %p231_p0, %p225_p11 }
  0x21   :  { %235 = shalt.err (!%p232_p1)
}
  0x22   :  { %34 = dma.hbm_to_vmem [thread:$0]  %s338_s1, 512, %s29_s27, [#allocation6], %s265_s22, %s265_s22, %s266_s23  }
  0x23   :  { %258 = dma.done.wait [#allocation3], 256  }
  0x24   :  { %259 = vsyncadd [#allocation3], 4294967040 }
  0x25   :  { %260 = dma.done.wait [#allocation6], 512  }
  0x26   :  { %261 = vsyncadd [#allocation6], 4294966784  ;;  %vm56_vm0 = vcmask 261120   ;;  %v45_v0 = vld [vmem:[#allocation5] sm:$0xff]  ;;  %v46_v1 = vld [vmem:[#allocation5 + $0x8] sm:$0xff]  ;;  %s268_s11 = smov [#allocation7]  }
  0x27   :  { %v47_v2 = vld [vmem:[#allocation5 + $0x10] sm:$0xff]  ;;  %v179_v3 = vpack.c.bf16 %v46_v1, %v45_v0  ;;  %v48_v4 = vld [vmem:[#allocation5 + $0x18] sm:$0xff]  ;;  %s146_s12 = sshll.u32 %s268_s11, 4  ;;  %vm138_vm1 = vcmask 785408   ;;  %s147_s12 = int_to_ptr.vmem [resolvable:$true] %s146_s12 }
  0x28   :  { %v43_v5 = vld [vmem:[#allocation2] sm:$0xff]  ;;  %v183_v6 = vpack.c.bf16 %v48_v4, %v47_v2  ;;  %v44_v7 = vld [vmem:[#allocation2 + $0x8] sm:$0xff]  ;;  %s236_s13 = scalar_lea.vmem %s147_s12, 256  ;;  %p241_p3 = scmp.lt.s32.totalorder %s147_s12, %s147_s12 }
  0x29   :  { %176 = vmatprep.mubr.msk.f32.mxu0 %vm56_vm0, %v43_v5  ;;  %180 = vmatprep.subr.bf16.mxu0 %v179_v3  ;;  %v159_v8 = vld [vmem:[%s339_s2] ss:$0 sm:$0xff]  ;;  %p237_p2 = scmp.ne.s32.totalorder %s147_s12, %s236_s13  ;;  %p242_p4 = scmp.lt.s32.totalorder %s236_s13, %s236_s13 }
  0x2a   :  { %182 = vmatpush3.bf16.msra.mxu0 %v179_v3 }
  0x2b   :  { %184 = vmatprep.subr.bf16.mxu0 %v183_v6  ;;  %p243_p5 = por %p242_p4, %p241_p3 }
  0x2d   :  { %p244_p6 = pnand %p243_p5, %p237_p2 }
  0x2e   :  { %186 = vmatpush3.bf16.msra.mxu0 %v183_v6 }
  0x31   :  { %177 = vmatmul.mubr.msk.f32.vlgmr.msra.gmra.mrb[0].mxu0 %vm56_vm0, %v44_v7 }
 0x104   :  { %v178_v9 = vpop.f32.mrb[0].mxu0 }
 0x105   :  { %v135_v10 = vadd.f32 %v178_v9, %v159_v8  ;;  %v129_v11 = vpop.f32.mrb[1].mxu0 }
 0x106   :  { %v130_v12 = vadd.f32 %v159_v8, %v129_v11 }
 0x107   :  { %140 = vst.msk [vmem:[#allocation7 + $0x8] sm:$0xff] %vm138_vm1, %v135_v10 }
 0x108   :  { %139 = vst.msk [vmem:[#allocation7] sm:$0xff] %vm138_vm1, %v130_v12 }
 0x109   :  { %247 = shalt.err (!%p244_p6)
}
 0x10a   :  { %s248_s2 = scalar_lea.hbm %s340_s3, 256 }
 0x10b   :  { %p249_p7 = scmp.ne.s32.totalorder %s340_s3, %s248_s2  ;;  %p252_p8 = scmp.lt.u32.totalorder %s248_s2, %s340_s3 }
 0x10d   :  { %p254_p9 = pnand %p252_p8, %p249_p7 }
 0x10f   :  { %257 = shalt.err (!%p254_p9)
}
 0x110   :  { %152 = dma.vmem_to_hbm [thread:$0]  %s147_s12, 256, %s340_s3, [#allocation4], %s265_s22, %s265_s22, %s266_s23  }
 0x111   :  { %262 = dma.done.wait [#allocation4], 256  }
 0x112   :  { %263 = vsyncadd [#allocation4], 4294967040 }
 0x113   :  { %156 = vsyncpa [#allocation3], 1 }
 0x114   :  { %157 = vsyncpa [#allocation6], 1 }
 0x115   :  { %158 = vsyncpa [#allocation4], 1 }

</bundles_post_ra>
